<compile_context>
chip_gen: v7x
topology: tpu7x:2x2x1
jax: 0.10.0
libtpu: 0.0.40
codegen_flags: <defaults>
</compile_context>

<pallas_src>
import math
import jax
import jax.numpy as jnp
from jax.experimental import pallas as pl
from jax.experimental.pallas import tpu as pltpu


# ------------------------- Pallas matmul kernel (hot path) -------------------------

def _round_up(x, m):
    return ((x + m - 1) // m) * m


def _pick_tile(total, candidates):
    """Pick the largest candidate that divides `total` (total is a multiple of 128)."""
    for c in candidates:
        if total % c == 0:
            return c
    return candidates[-1]


def _matmul_kernel(a_ref, w_ref, o_ref, acc_ref):
    # grid = (M/tm, N/tn, K/tk); K (reduction) is the last, "arbitrary" axis.
    @pl.when(pl.program_id(2) == 0)
    def _():
        acc_ref[...] = jnp.zeros_like(acc_ref)

    acc_ref[...] += jnp.dot(a_ref[...], w_ref[...],
                            preferred_element_type=jnp.float32)

    @pl.when(pl.program_id(2) == pl.num_programs(2) - 1)
    def _():
        o_ref[...] = acc_ref[...].astype(o_ref.dtype)


def pallas_matmul(a, w, *, compute_dtype=jnp.float32):
    """a: (M, K), w: (K, N) -> (M, N) float32, K/N/M-tiled Pallas matmul.

    compute_dtype=jnp.bfloat16 halves A/W DMA bytes and ~doubles MXU throughput
    on v6e/v7x (accumulation stays float32); default float32 for exactness.
    """
    M, K = a.shape
    K2, N = w.shape
    assert K == K2

    # ---- padded sizes / tile selection -------------------------------------
    # Lane-dense output: N padded to a multiple of 128 (unmasked vector stores,
    # full MXU result columns). Extra columns are sliced off by the caller.
    N_pad = _round_up(N, 128)
    # K padded to a multiple of 128 with zeros -> result unchanged.
    K_pad = _round_up(K, 128)

    tn = _pick_tile(N_pad, (256, 128))
    tk = _pick_tile(K_pad, (512, 384, 256, 128))

    # M tile: fat tiles amortize the ~0.35 us/step pipeline overhead; for small
    # problems collapse the whole M extent into a single step (padded to 8 only).
    if M <= 512:
        tm = _round_up(M, 8)
    else:
        tm = 512
    M_pad = _round_up(M, tm)

    if compute_dtype != jnp.float32:
        a = a.astype(compute_dtype)
        w = w.astype(compute_dtype)

    # Zero-pad only the ragged tails that actually exist.
    if (M_pad, K_pad) != (M, K):
        a = jnp.pad(a, ((0, M_pad - M), (0, K_pad - K)))
    if (K_pad, N_pad) != (K, N):
        w = jnp.pad(w, ((0, K_pad - K), (0, N_pad - N)))

    grid = (M_pad // tm, N_pad // tn, K_pad // tk)

    # Live VMEM (double-buffered inputs/outputs + f32 acc) stays ~<= 5 MiB even at
    # tm=512, tk=512, tn=256 f32, so the default scoped-VMEM limit is ample on
    # v5e/v6e/v7x; no vmem_limit_bytes override needed.
    out = pl.pallas_call(
        _matmul_kernel,
        out_shape=jax.ShapeDtypeStruct((M_pad, N_pad), jnp.float32),
        grid_spec=pltpu.PrefetchScalarGridSpec(
            num_scalar_prefetch=0,
            grid=grid,
            in_specs=[
                pl.BlockSpec((tm, tk), lambda i, j, k: (i, k)),
                pl.BlockSpec((tk, tn), lambda i, j, k: (k, j)),
            ],
            out_specs=pl.BlockSpec((tm, tn), lambda i, j, k: (i, j)),
            scratch_shapes=[pltpu.VMEM((tm, tn), jnp.float32)],
        ),
        compiler_params=pltpu.CompilerParams(
            dimension_semantics=("parallel", "parallel", "arbitrary")),
    )(a, w)

    if (M_pad, N_pad) != (M, N):
        out = out[:M, :N]
    return out


# ------------------------------ Conv2d module in JAX -------------------------------

class Conv2dPallas:
    def __init__(self, in_channels, out_channels, kernel_size,
                 stride=1, padding=0, dilation=1, groups=1, bias=True,
                 key=None, compute_dtype=jnp.float32):
        if isinstance(kernel_size, int):
            kernel_size = (kernel_size, kernel_size)
        if isinstance(stride, int):
            stride = (stride, stride)
        if dilation != 1:
            # The reference forward's output-size math also assumes dilation == 1.
            raise NotImplementedError("dilation != 1 is not supported")
        if groups != 1:
            # The reference forward's weight.view/matmul also assumes groups == 1.
            raise NotImplementedError("groups != 1 is not supported")
        if not isinstance(padding, int):
            raise NotImplementedError("only int padding is supported (as in the reference)")

        self.in_channels = in_channels
        self.out_channels = out_channels
        self.kernel_size = kernel_size
        self.stride = stride
        self.padding = padding
        self.dilation = dilation
        self.groups = groups
        self.compute_dtype = compute_dtype

        if key is None:
            key = jax.random.PRNGKey(42)
        wkey, bkey = jax.random.split(key)

        # kaiming_uniform_(a=sqrt(5)) equivalent: bound = gain * sqrt(3 / fan_in),
        # gain = sqrt(2 / (1 + a^2)) = sqrt(1/3)
        fan_in = (in_channels // groups) * kernel_size[0] * kernel_size[1]
        gain = math.sqrt(2.0 / (1.0 + 5.0))
        w_bound = gain * math.sqrt(3.0 / fan_in)
        self.weight = jax.random.uniform(
            wkey,
            (out_channels, in_channels // groups, kernel_size[0], kernel_size[1]),
            dtype=jnp.float32, minval=-w_bound, maxval=w_bound)

        if bias:
            b_bound = 1.0 / math.sqrt(fan_in)
            # bias is defined for parity with the PyTorch module, but forward() never uses it.
            self.bias = jax.random.uniform(
                bkey, (out_channels,), dtype=jnp.float32,
                minval=-b_bound, maxval=b_bound)
        else:
            self.bias = None

    def _im2col(self, x):
        """im2col producing A = (b*out_h*out_w, C*KH*KW) directly.

        Column ordering matches torch.nn.Unfold: K index = c*KH*KW + i*KW + j.
        Built in (b, out_h, out_w, K) order so no transpose of the KH*KW-inflated
        buffer is needed before the matmul.
        """
        b, c, h, w = x.shape
        kh, kw = self.kernel_size
        sh, sw = self.stride
        p = self.padding
        if p > 0:
            x = jnp.pad(x, ((0, 0), (0, 0), (p, p), (p, p)))
        out_h = (h + 2 * p - kh) // sh + 1
        out_w = (w + 2 * p - kw) // sw + 1

        # One cheap transpose of the (small) raw input to NHWC, not of the im2col buffer.
        x_nhwc = jnp.transpose(x, (0, 2, 3, 1))            # (b, H, W, c)
        cols = []
        for i in range(kh):
            for j in range(kw):
                cols.append(x_nhwc[:, i:i + sh * out_h:sh, j:j + sw * out_w:sw, :])
        patches = jnp.stack(cols, axis=4)                  # (b, oh, ow, c, kh*kw)
        a = patches.reshape(b * out_h * out_w, c * kh * kw)
        return a, out_h, out_w

    def __call__(self, x):
        b, c, h, w = x.shape
        a, out_h, out_w = self._im2col(x)                          # (M, K)

        # weight.view(out_channels, -1).t() -> (K, N)
        w_mat = self.weight.reshape(self.out_channels, -1).T

        out_flat = pallas_matmul(a, w_mat,
                                 compute_dtype=self.compute_dtype)  # (M, N)

        out = out_flat.reshape(b, out_h, out_w, self.out_channels)  # (b, oh, ow, N)
        out = jnp.transpose(out, (0, 3, 1, 2))                      # -> NCHW
        return out


# ------------------------------ reference (pure JAX) --------------------------------

def conv2d_ref(x, weight, stride, padding):
    return jax.lax.conv_general_dilated(
        x, weight, window_strides=stride,
        padding=[(padding, padding), (padding, padding)],
        dimension_numbers=("NCHW", "OIHW", "NCHW"))


if __name__ == "__main__":
    # Matches the module's example: Conv2d(3, 16, 2)
    B, C, H, W = 2, 3, 16, 16

    key = jax.random.PRNGKey(0)
    xkey, wkey = jax.random.split(key)

    conv = Conv2dPallas(in_channels=3, out_channels=16, kernel_size=2, key=wkey)
    x = jax.random.normal(xkey, (B, C, H, W), dtype=jnp.float32)

    out = conv(x)
    out = jax.block_until_ready(out)

    expected_shape = (B, 16, H - 2 + 1, W - 2 + 1)
    assert out.shape == expected_shape, (out.shape, expected_shape)

    ref = conv2d_ref(x, conv.weight, conv.stride, conv.padding)
    assert jnp.allclose(out, ref, atol=1e-4, rtol=1e-4), float(jnp.max(jnp.abs(out - ref)))

    print("KERNEL_OK")
</pallas_src>

<mosaic_0001>
module attributes {stable_mosaic.version = 11 : i64} {
  func.func @_matmul_kernel(%arg0: i32, %arg1: i32, %arg2: i32, %arg3: memref<456x128xf32, #tpu.memory_space<vmem>>, %arg4: memref<128x128xf32, #tpu.memory_space<vmem>>, %arg5: memref<456x128xf32, #tpu.memory_space<vmem>>, %arg6: memref<456x128xf32, #tpu.memory_space<vmem>>) attributes {dimension_semantics = [#tpu.dimension_semantics<parallel>, #tpu.dimension_semantics<parallel>, #tpu.dimension_semantics<arbitrary>], iteration_bounds = array<i64: 1, 1, 1>, scalar_prefetch = 0 : i64, scratch_operands = 1 : i64, tpu.core_type = #tpu.core_type<tc>, window_params = [{transform_indices = @transform_0, window_bounds = array<i64: 456, 128>}, {transform_indices = @transform_1, window_bounds = array<i64: 128, 128>}, {transform_indices = @transform_2, window_bounds = array<i64: 456, 128>}]} {
    %c0_i32 = arith.constant 0 : i32
    %0 = arith.cmpi eq, %arg2, %c0_i32 : i32
    %1 = arith.extui %0 : i1 to i32
    %c0_i32_0 = arith.constant 0 : i32
    %2 = arith.cmpi ne, %1, %c0_i32_0 : i32
    scf.if %2 {
      %cst_10 = arith.constant 0.000000e+00 : f32
      %12 = vector.broadcast %cst_10 : f32 to vector<456x128xf32>
      %c0_11 = arith.constant 0 : index
      %c0_12 = arith.constant 0 : index
      %13 = vector.load %arg6[%c0_11, %c0_12] : memref<456x128xf32, #tpu.memory_space<vmem>>, vector<456x128xf32>
      tpu.vector_store %arg6[%c0_11, %c0_12], %12 {strides = array<i32>} : memref<456x128xf32, #tpu.memory_space<vmem>>, vector<456x128xf32>,
    } else {
    }
    %c0 = arith.constant 0 : index
    %c0_1 = arith.constant 0 : index
    %3 = vector.load %arg6[%c0, %c0_1] : memref<456x128xf32, #tpu.memory_space<vmem>>, vector<456x128xf32>
    %c0_2 = arith.constant 0 : index
    %c0_3 = arith.constant 0 : index
    %4 = vector.load %arg3[%c0_2, %c0_3] : memref<456x128xf32, #tpu.memory_space<vmem>>, vector<456x128xf32>
    %c0_4 = arith.constant 0 : index
    %c0_5 = arith.constant 0 : index
    %5 = vector.load %arg4[%c0_4, %c0_5] : memref<128x128xf32, #tpu.memory_space<vmem>>, vector<128x128xf32>
    %cst = arith.constant dense<0.000000e+00> : vector<456x128xf32>
    %6 = tpu.matmul %4, %5, %cst {dimension_numbers = #tpu.dot_dimension_numbers<[1], [0], [0], [1], [0, 0, 1, 1], [], []>} : vector<456x128xf32>, vector<128x128xf32>, vector<456x128xf32> -> vector<456x128xf32>
    %7 = arith.addf %3, %6 : vector<456x128xf32>
    %c0_6 = arith.constant 0 : index
    %c0_7 = arith.constant 0 : index
    %8 = vector.load %arg6[%c0_6, %c0_7] : memref<456x128xf32, #tpu.memory_space<vmem>>, vector<456x128xf32>
    tpu.vector_store %arg6[%c0_6, %c0_7], %7 {strides = array<i32>} : memref<456x128xf32, #tpu.memory_space<vmem>>, vector<456x128xf32>,
    %c0_i32_8 = arith.constant 0 : i32
    %9 = arith.cmpi eq, %arg2, %c0_i32_8 : i32
    %10 = arith.extui %9 : i1 to i32
    %c0_i32_9 = arith.constant 0 : i32
    %11 = arith.cmpi ne, %10, %c0_i32_9 : i32
    scf.if %11 {
      %c0_10 = arith.constant 0 : index
      %c0_11 = arith.constant 0 : index
      %12 = vector.load %arg6[%c0_10, %c0_11] : memref<456x128xf32, #tpu.memory_space<vmem>>, vector<456x128xf32>
      %c0_12 = arith.constant 0 : index
      %c0_13 = arith.constant 0 : index
      %13 = vector.load %arg5[%c0_12, %c0_13] : memref<456x128xf32, #tpu.memory_space<vmem>>, vector<456x128xf32>
      tpu.vector_store %arg5[%c0_12, %c0_13], %12 {strides = array<i32>} : memref<456x128xf32, #tpu.memory_space<vmem>>, vector<456x128xf32>,
    } else {
    }
    return
  }
  func.func @transform_0(%arg0: i32, %arg1: i32, %arg2: i32) -> (i32, i32) {
    %c0_i32 = arith.constant 0 : i32
    return %arg0, %arg2 : i32, i32
  }
  func.func @transform_1(%arg0: i32, %arg1: i32, %arg2: i32) -> (i32, i32) {
    %c0_i32 = arith.constant 0 : i32
    return %arg2, %arg1 : i32, i32
  }
  func.func @transform_2(%arg0: i32, %arg1: i32, %arg2: i32) -> (i32, i32) {
    %c0_i32 = arith.constant 0 : i32
    return %arg0, %arg1 : i32, i32
  }
}

</mosaic_0001>

<bundles_post_ra>
// kernel: tpu_custom_call.1
= control target key start
LH: loop header
LB: loop body
LE: loop exit
PB: predicated region body
PF: predicated region fallthrough
CT: control target
= control target key end

     0   :  { %7 = vsyncpa [#allocation4], 0  ;;  %s1408_s0 = inlined_call_operand.hbm [shape: f32[456,128], index: 0, kind: input, shape index: {}]   ;;  %s1409_s1 = inlined_call_operand.hbm [shape: f32[128,128], index: 1, kind: input, shape index: {}]   ;;  %s1410_s2 = inlined_call_operand.hbm [shape: f32[456,128], index: 2, kind: output, shape index: {}]  }
   0x1   :  { %8 = vsyncpa [#allocation7], 0 }
   0x2   :  { %9 = vsyncpa [#allocation5], 0  ;;  %s1226_s9 = smov [#allocation3]   ;;  %s1154_s13 = scalar_lea.hbm %s1408_s0, 7296 }
   0x3   :  { %s15_s10 = sshll.u32 %s1226_s9, 4  ;;  %p1155_p0 = scmp.ne.s32.totalorder %s1408_s0, %s1154_s13  ;;  %s16_s10 = int_to_ptr.vmem [resolvable:$true] %s15_s10 }
   0x4   :  { %p1158_p1 = scmp.lt.u32.totalorder %s1154_s13, %s1408_s0 }
   0x6   :  { %p1160_p2 = pnand %p1158_p1, %p1155_p0 }
   0x8   :  { %1163 = shalt.err (!%p1160_p2)
}
   0x9   :  { %s1164_s18 = scalar_lea.vmem %s16_s10, 7296  ;;  %p1169_p4 = scmp.lt.s32.totalorder %s16_s10, %s16_s10 }
   0xa   :  { %p1165_p3 = scmp.ne.s32.totalorder %s16_s10, %s1164_s18  ;;  %p1170_p5 = scmp.lt.s32.totalorder %s1164_s18, %s1164_s18 }
   0xc   :  { %p1171_p6 = por %p1170_p5, %p1169_p4 }
   0xe   :  { %p1172_p7 = pnand %p1171_p6, %p1165_p3 }
  0x10   :  { %1175 = shalt.err (!%p1172_p7)
}
  0x11   :  { %s1227_s19 = smov 128   ;;  %s1228_s20 = smov 8  }
  0x12   :  { %21 = dma.hbm_to_vmem [thread:$0]  %s1408_s0, 7296, %s16_s10, [#allocation4], %s1227_s19, %s1227_s19, %s1228_s20  }
  0x13   :  { %s1229_s23 = smov [#allocation6]   ;;  %s1176_s27 = scalar_lea.hbm %s1409_s1, 2048 }
  0x14   :  { %s27_s24 = sshll.u32 %s1229_s23, 4  ;;  %p1177_p8 = scmp.ne.s32.totalorder %s1409_s1, %s1176_s27  ;;  %s28_s24 = int_to_ptr.vmem [resolvable:$true] %s27_s24 }
  0x15   :  { %p1180_p9 = scmp.lt.u32.totalorder %s1176_s27, %s1409_s1 }
  0x17   :  { %p1182_p10 = pnand %p1180_p9, %p1177_p8 }
  0x19   :  { %1185 = shalt.err (!%p1182_p10)
}
  0x1a   :  { %s1186_s4 = scalar_lea.vmem %s28_s24, 2048  ;;  %p1191_p12 = scmp.lt.s32.totalorder %s28_s24, %s28_s24 }
  0x1b   :  { %p1187_p11 = scmp.ne.s32.totalorder %s28_s24, %s1186_s4  ;;  %p1192_p13 = scmp.lt.s32.totalorder %s1186_s4, %s1186_s4 }
  0x1d   :  { %p1193_p0 = por %p1192_p13, %p1191_p12 }
  0x1f   :  { %p1194_p1 = pnand %p1193_p0, %p1187_p11 }
  0x21   :  { %1197 = shalt.err (!%p1194_p1)
}
  0x22   :  { %33 = dma.hbm_to_vmem [thread:$0]  %s1409_s1, 2048, %s28_s24, [#allocation7], %s1227_s19, %s1227_s19, %s1228_s20  }
  0x23   :  { %1220 = dma.done.wait [#allocation4], 7296  }
  0x24   :  { %1221 = vsyncadd [#allocation4], 4294960000 }
  0x25   :  { %1222 = dma.done.wait [#allocation7], 2048  }
  0x26   :  { %1223 = vsyncadd [#allocation7], 4294965248  ;;  %v1230_v0 = vmov 0.0|0.0   ;;  %vm1231_vm0 = vmmov 0   ;;  %v1232_v1 = vmov 0.0   ;;  %v215_v2 = vld [vmem:[#allocation6] sm:$0xff] }
  0x27   :  { %1106 = vmatprep.subr.bf16.mxu0 %v1230_v0  ;;  %1130 = vmatprep.subr.bf16.mxu1 %v1230_v0  ;;  %v216_v3 = vld [vmem:[#allocation6 + $0x8] sm:$0xff]  ;;  %v217_v4 = vld [vmem:[#allocation6 + $0x10] sm:$0xff]  ;;  %v218_v6 = vld [vmem:[#allocation6 + $0x18] sm:$0xff]  ;;  %s1233_s1 = smov [#allocation8]  }
  0x28   :  { %935 = vmatprep.mubr.msk.f32.mxu0 %vm1231_vm0, %v1232_v1  ;;  %1022 = vmatprep.mubr.msk.f32.mxu1 %vm1231_vm0, %v1232_v1  ;;  %v1107_v5 = vpack.c.bf16 %v216_v3, %v215_v2  ;;  %v1110_v7 = vpack.c.bf16 %v218_v6, %v217_v4  ;;  %v219_v8 = vld [vmem:[#allocation6 + $0x20] sm:$0xff]  ;;  %v220_v9 = vld [vmem:[#allocation6 + $0x28] sm:$0xff]  ;;  %v221_v11 = vld [vmem:[#allocation6 + $0x30] sm:$0xff]  ;;  %s817_s6 = sshll.u32 %s1233_s1, 4  ;;  %s818_s6 = int_to_ptr.vmem [resolvable:$true] %s817_s6 }
  0x29   :  { %v1113_v10 = vpack.c.bf16 %v220_v9, %v219_v8  ;;  %v222_v12 = vld [vmem:[#allocation6 + $0x38] sm:$0xff]  ;;  %v223_v14 = vld [vmem:[#allocation6 + $0x40] sm:$0xff]  ;;  %v224_v15 = vld [vmem:[#allocation6 + $0x48] sm:$0xff]  ;;  %s1198_s7 = scalar_lea.vmem %s818_s6, 7296  ;;  %p1203_p3 = scmp.lt.s32.totalorder %s818_s6, %s818_s6 }
  0x2a   :  { %1108 = vmatpush3.bf16.msra.mxu0 %v1107_v5  ;;  %1138 = vmatpush3.bf16.msra.mxu1 %v1107_v5  ;;  %v1116_v13 = vpack.c.bf16 %v222_v12, %v221_v11  ;;  %v1119_v16 = vpack.c.bf16 %v224_v15, %v223_v14  ;;  %v225_v17 = vld [vmem:[#allocation6 + $0x50] sm:$0xff]  ;;  %v226_v18 = vld [vmem:[#allocation6 + $0x58] sm:$0xff]  ;;  %v227_v20 = vld [vmem:[#allocation6 + $0x60] sm:$0xff]  ;;  %p1199_p2 = scmp.ne.s32.totalorder %s818_s6, %s1198_s7  ;;  %p1204_p4 = scmp.lt.s32.totalorder %s1198_s7, %s1198_s7 }
  0x2b   :  { %1109 = vmatprep.subr.bf16.mxu0 %v1230_v0  ;;  %1131 = vmatprep.subr.bf16.mxu1 %v1230_v0  ;;  %v1122_v19 = vpack.c.bf16 %v226_v18, %v225_v17  ;;  %v228_v21 = vld [vmem:[#allocation6 + $0x68] sm:$0xff]  ;;  %v229_v23 = vld [vmem:[#allocation6 + $0x70] sm:$0xff]  ;;  %v230_v24 = vld [vmem:[#allocation6 + $0x78] sm:$0xff] }
  0x2c   :  { %v1125_v22 = vpack.c.bf16 %v228_v21, %v227_v20  ;;  %v1128_v25 = vpack.c.bf16 %v230_v24, %v229_v23  ;;  %v158_v26 = vld [vmem:[#allocation3] sm:$0xff]  ;;  %v187_v27 = vld [vmem:[#allocation3 + $0xe8] sm:$0xff]  ;;  %v188_v29 = vld [vmem:[#allocation3 + $0xf0] sm:$0xff]  ;;  %p1205_p5 = por %p1204_p4, %p1203_p3 }
  0x2d   :  { %v159_v28 = vld [vmem:[#allocation3 + $0x8] sm:$0xff]  ;;  %v160_v30 = vld [vmem:[#allocation3 + $0x10] sm:$0xff]  ;;  %v189_v31 = vld [vmem:[#allocation3 + $0xf8] sm:$0xff] }
  0x2e   :  { %1111 = vmatpush3.bf16.msra.mxu0 %v1110_v7  ;;  %1139 = vmatpush3.bf16.msra.mxu1 %v1110_v7  ;;  %v161_v32 = vld [vmem:[#allocation3 + $0x18] sm:$0xff]  ;;  %v190_v33 = vld [vmem:[#allocation3 + $0x100] sm:$0xff]  ;;  %v191_v35 = vld [vmem:[#allocation3 + $0x108] sm:$0xff]  ;;  %p1206_p6 = pnand %p1205_p5, %p1199_p2 }
  0x2f   :  { %1112 = vmatprep.subr.bf16.mxu0 %v1230_v0  ;;  %1132 = vmatprep.subr.bf16.mxu1 %v1230_v0  ;;  %v162_v34 = vld [vmem:[#allocation3 + $0x20] sm:$0xff]  ;;  %v163_v36 = vld [vmem:[#allocation3 + $0x28] sm:$0xff]  ;;  %v192_v37 = vld [vmem:[#allocation3 + $0x110] sm:$0xff] }
  0x30   :  { %v164_v38 = vld [vmem:[#allocation3 + $0x30] sm:$0xff]  ;;  %v193_v39 = vld [vmem:[#allocation3 + $0x118] sm:$0xff]  ;;  %v194_v41 = vld [vmem:[#allocation3 + $0x120] sm:$0xff] }
  0x31   :  { %v165_v40 = vld [vmem:[#allocation3 + $0x38] sm:$0xff]  ;;  %v166_v42 = vld [vmem:[#allocation3 + $0x40] sm:$0xff]  ;;  %v195_v43 = vld [vmem:[#allocation3 + $0x128] sm:$0xff] }
  0x32   :  { %1114 = vmatpush3.bf16.msra.mxu0 %v1113_v10  ;;  %1140 = vmatpush3.bf16.msra.mxu1 %v1113_v10  ;;  %v167_v44 = vld [vmem:[#allocation3 + $0x48] sm:$0xff]  ;;  %v196_v45 = vld [vmem:[#allocation3 + $0x130] sm:$0xff]  ;;  %v197_v47 = vld [vmem:[#allocation3 + $0x138] sm:$0xff] }
  0x33   :  { %1115 = vmatprep.subr.bf16.mxu0 %v1230_v0  ;;  %1133 = vmatprep.subr.bf16.mxu1 %v1230_v0  ;;  %v168_v46 = vld [vmem:[#allocation3 + $0x50] sm:$0xff]  ;;  %v169_v48 = vld [vmem:[#allocation3 + $0x58] sm:$0xff]  ;;  %v198_v49 = vld [vmem:[#allocation3 + $0x140] sm:$0xff] }
  0x34   :  { %v170_v50 = vld [vmem:[#allocation3 + $0x60] sm:$0xff]  ;;  %v199_v51 = vld [vmem:[#allocation3 + $0x148] sm:$0xff]  ;;  %v200_v53 = vld [vmem:[#allocation3 + $0x150] sm:$0xff] }
  0x35   :  { %v171_v52 = vld [vmem:[#allocation3 + $0x68] sm:$0xff]  ;;  %v172_v54 = vld [vmem:[#allocation3 + $0x70] sm:$0xff]  ;;  %v201_v55 = vld [vmem:[#allocation3 + $0x158] sm:$0xff] }
  0x36   :  { %1117 = vmatpush3.bf16.msra.mxu0 %v1116_v13  ;;  %1141 = vmatpush3.bf16.msra.mxu1 %v1116_v13  ;;  %v173_v56 = vld [vmem:[#allocation3 + $0x78] sm:$0xff]  ;;  %v202_v57 = vld [vmem:[#allocation3 + $0x160] sm:$0xff]  ;;  %v203_v59 = vld [vmem:[#allocation3 + $0x168] sm:$0xff] }
  0x37   :  { %1118 = vmatprep.subr.bf16.mxu0 %v1230_v0  ;;  %1134 = vmatprep.subr.bf16.mxu1 %v1230_v0  ;;  %v174_v58 = vld [vmem:[#allocation3 + $0x80] sm:$0xff]  ;;  %v175_v60 = vld [vmem:[#allocation3 + $0x88] sm:$0xff]  ;;  %v204_v61 = vld [vmem:[#allocation3 + $0x170] sm:$0xff] }
  0x38   :  { %v176_v62 = vld [vmem:[#allocation3 + $0x90] sm:$0xff]  ;;  %v205_v63 = vld [vmem:[#allocation3 + $0x178] sm:$0xff]  ;;  %v206_v2 = vld [vmem:[#allocation3 + $0x180] sm:$0xff] }
  0x39   :  { %v178_v3 = vld [vmem:[#allocation3 + $0xa0] sm:$0xff]  ;;  %v207_v4 = vld [vmem:[#allocation3 + $0x188] sm:$0xff]  ;;  %v208_v6 = vld [vmem:[#allocation3 + $0x190] sm:$0xff] }
  0x3a   :  { %1120 = vmatpush3.bf16.msra.mxu0 %v1119_v16  ;;  %1142 = vmatpush3.bf16.msra.mxu1 %v1119_v16  ;;  %v179_v5 = vld [vmem:[#allocation3 + $0xa8] sm:$0xff]  ;;  %v180_v7 = vld [vmem:[#allocation3 + $0xb0] sm:$0xff]  ;;  %v209_v8 = vld [vmem:[#allocation3 + $0x198] sm:$0xff] }
  0x3b   :  { %1121 = vmatprep.subr.bf16.mxu0 %v1230_v0  ;;  %1135 = vmatprep.subr.bf16.mxu1 %v1230_v0  ;;  %v181_v9 = vld [vmem:[#allocation3 + $0xb8] sm:$0xff]  ;;  %v210_v10 = vld [vmem:[#allocation3 + $0x1a0] sm:$0xff]  ;;  %v211_v12 = vld [vmem:[#allocation3 + $0x1a8] sm:$0xff] }
  0x3c   :  { %v182_v11 = vld [vmem:[#allocation3 + $0xc0] sm:$0xff]  ;;  %v183_v13 = vld [vmem:[#allocation3 + $0xc8] sm:$0xff]  ;;  %v212_v14 = vld [vmem:[#allocation3 + $0x1b0] sm:$0xff] }
  0x3d   :  { %v184_v15 = vld [vmem:[#allocation3 + $0xd0] sm:$0xff]  ;;  %v213_v16 = vld [vmem:[#allocation3 + $0x1b8] sm:$0xff]  ;;  %v214_v18 = vld [vmem:[#allocation3 + $0x1c0] sm:$0xff] }
  0x3e   :  { %1123 = vmatpush3.bf16.msra.mxu0 %v1122_v19  ;;  %1143 = vmatpush3.bf16.msra.mxu1 %v1122_v19  ;;  %v185_v17 = vld [vmem:[#allocation3 + $0xd8] sm:$0xff]  ;;  %v186_v19 = vld [vmem:[#allocation3 + $0xe0] sm:$0xff] }
  0x3f   :  { %1124 = vmatprep.subr.bf16.mxu0 %v1230_v0  ;;  %1136 = vmatprep.subr.bf16.mxu1 %v1230_v0 }
  0x42   :  { %1126 = vmatpush3.bf16.msra.mxu0 %v1125_v22  ;;  %1144 = vmatpush3.bf16.msra.mxu1 %v1125_v22 }
  0x43   :  { %1127 = vmatprep.subr.bf16.mxu0 %v1230_v0  ;;  %1137 = vmatprep.subr.bf16.mxu1 %v1230_v0  ;;  %v177_v0 = vld [vmem:[#allocation3 + $0x98] sm:$0xff] }
  0x46   :  { %1129 = vmatpush3.bf16.msra.mxu0 %v1128_v25  ;;  %1145 = vmatpush3.bf16.msra.mxu1 %v1128_v25 }
  0x49   :  { %936 = vmatmul.mubr.f32.vlgmr.msra.gmra.mrb[0].mxu0 %v158_v26  ;;  %1023 = vmatmul.mubr.f32.vlgmr.msra.gmra.mrb[0].mxu1 %v187_v27 }
  0x4a   :  { %938 = vmatprep.mubr.msk.f32.mxu0 %vm1231_vm0, %v1232_v1  ;;  %1025 = vmatprep.mubr.msk.f32.mxu1 %vm1231_vm0, %v1232_v1 }
  0x4d   :  { %939 = vmatmul.mubr.f32.gmra.mrb[2].mxu0 %v159_v28  ;;  %1026 = vmatmul.mubr.f32.gmra.mrb[2].mxu1 %v188_v29 }
  0x4e   :  { %941 = vmatprep.mubr.msk.f32.mxu0 %vm1231_vm0, %v1232_v1  ;;  %1028 = vmatprep.mubr.msk.f32.mxu1 %vm1231_vm0, %v1232_v1 }
  0x51   :  { %942 = vmatmul.mubr.f32.gmra.mrb[4].mxu0 %v160_v30  ;;  %1029 = vmatmul.mubr.f32.gmra.mrb[4].mxu1 %v189_v31 }
  0x52   :  { %944 = vmatprep.mubr.msk.f32.mxu0 %vm1231_vm0, %v1232_v1  ;;  %1031 = vmatprep.mubr.msk.f32.mxu1 %vm1231_vm0, %v1232_v1 }
  0x55   :  { %945 = vmatmul.mubr.f32.gmra.mrb[6].mxu0 %v161_v32  ;;  %1032 = vmatmul.mubr.f32.gmra.mrb[6].mxu1 %v190_v33 }
  0x56   :  { %947 = vmatprep.mubr.msk.f32.mxu0 %vm1231_vm0, %v1232_v1  ;;  %1034 = vmatprep.mubr.msk.f32.mxu1 %vm1231_vm0, %v1232_v1 }
  0x59   :  { %948 = vmatmul.mubr.f32.gmra.mrb[8].mxu0 %v162_v34  ;;  %1035 = vmatmul.mubr.f32.gmra.mrb[8].mxu1 %v191_v35 }
  0x5a   :  { %950 = vmatprep.mubr.msk.f32.mxu0 %vm1231_vm0, %v1232_v1  ;;  %1037 = vmatprep.mubr.msk.f32.mxu1 %vm1231_vm0, %v1232_v1 }
  0x5d   :  { %951 = vmatmul.mubr.f32.gmra.mrb[10].mxu0 %v163_v36  ;;  %1038 = vmatmul.mubr.f32.gmra.mrb[10].mxu1 %v192_v37 }
  0x5e   :  { %953 = vmatprep.mubr.msk.f32.mxu0 %vm1231_vm0, %v1232_v1  ;;  %1040 = vmatprep.mubr.msk.f32.mxu1 %vm1231_vm0, %v1232_v1 }
  0x61   :  { %954 = vmatmul.mubr.f32.gmra.mrb[12].mxu0 %v164_v38  ;;  %1041 = vmatmul.mubr.f32.gmra.mrb[12].mxu1 %v193_v39 }
  0x62   :  { %956 = vmatprep.mubr.msk.f32.mxu0 %vm1231_vm0, %v1232_v1  ;;  %1043 = vmatprep.mubr.msk.f32.mxu1 %vm1231_vm0, %v1232_v1 }
  0x65   :  { %957 = vmatmul.mubr.f32.gmra.mrb[14].mxu0 %v165_v40  ;;  %1044 = vmatmul.mubr.f32.gmra.mrb[14].mxu1 %v194_v41 }
  0x66   :  { %959 = vmatprep.mubr.msk.f32.mxu0 %vm1231_vm0, %v1232_v1  ;;  %1046 = vmatprep.mubr.msk.f32.mxu1 %vm1231_vm0, %v1232_v1 }
  0x69   :  { %960 = vmatmul.mubr.f32.gmra.mrb[16].mxu0 %v166_v42  ;;  %1047 = vmatmul.mubr.f32.gmra.mrb[16].mxu1 %v195_v43 }
  0x6a   :  { %962 = vmatprep.mubr.msk.f32.mxu0 %vm1231_vm0, %v1232_v1  ;;  %1049 = vmatprep.mubr.msk.f32.mxu1 %vm1231_vm0, %v1232_v1 }
  0x6d   :  { %963 = vmatmul.mubr.f32.gmra.mrb[18].mxu0 %v167_v44  ;;  %1050 = vmatmul.mubr.f32.gmra.mrb[18].mxu1 %v196_v45 }
  0x6e   :  { %965 = vmatprep.mubr.msk.f32.mxu0 %vm1231_vm0, %v1232_v1  ;;  %1052 = vmatprep.mubr.msk.f32.mxu1 %vm1231_vm0, %v1232_v1 }
  0x71   :  { %966 = vmatmul.mubr.f32.gmra.mrb[20].mxu0 %v168_v46  ;;  %1053 = vmatmul.mubr.f32.gmra.mrb[20].mxu1 %v197_v47 }
  0x72   :  { %968 = vmatprep.mubr.msk.f32.mxu0 %vm1231_vm0, %v1232_v1  ;;  %1055 = vmatprep.mubr.msk.f32.mxu1 %vm1231_vm0, %v1232_v1 }
  0x75   :  { %969 = vmatmul.mubr.f32.gmra.mrb[22].mxu0 %v169_v48  ;;  %1056 = vmatmul.mubr.f32.gmra.mrb[22].mxu1 %v198_v49 }
  0x76   :  { %971 = vmatprep.mubr.msk.f32.mxu0 %vm1231_vm0, %v1232_v1  ;;  %1058 = vmatprep.mubr.msk.f32.mxu1 %vm1231_vm0, %v1232_v1 }
  0x79   :  { %972 = vmatmul.mubr.f32.gmra.mrb[24].mxu0 %v170_v50  ;;  %1059 = vmatmul.mubr.f32.gmra.mrb[24].mxu1 %v199_v51 }
  0x7a   :  { %974 = vmatprep.mubr.msk.f32.mxu0 %vm1231_vm0, %v1232_v1  ;;  %1061 = vmatprep.mubr.msk.f32.mxu1 %vm1231_vm0, %v1232_v1 }
  0x7d   :  { %975 = vmatmul.mubr.f32.gmra.mrb[26].mxu0 %v171_v52  ;;  %1062 = vmatmul.mubr.f32.gmra.mrb[26].mxu1 %v200_v53 }
  0x7e   :  { %977 = vmatprep.mubr.msk.f32.mxu0 %vm1231_vm0, %v1232_v1  ;;  %1064 = vmatprep.mubr.msk.f32.mxu1 %vm1231_vm0, %v1232_v1 }
  0x81   :  { %978 = vmatmul.mubr.f32.gmra.mrb[28].mxu0 %v172_v54  ;;  %1065 = vmatmul.mubr.f32.gmra.mrb[28].mxu1 %v201_v55 }
  0x82   :  { %980 = vmatprep.mubr.msk.f32.mxu0 %vm1231_vm0, %v1232_v1  ;;  %1067 = vmatprep.mubr.msk.f32.mxu1 %vm1231_vm0, %v1232_v1 }
  0x85   :  { %981 = vmatmul.mubr.f32.gmra.mrb[30].mxu0 %v173_v56  ;;  %1068 = vmatmul.mubr.f32.gmra.mrb[30].mxu1 %v202_v57 }
  0x86   :  { %983 = vmatprep.mubr.msk.f32.mxu0 %vm1231_vm0, %v1232_v1  ;;  %1070 = vmatprep.mubr.msk.f32.mxu1 %vm1231_vm0, %v1232_v1 }
  0x89   :  { %984 = vmatmul.mubr.f32.gmra.mrb[32].mxu0 %v174_v58  ;;  %1071 = vmatmul.mubr.f32.gmra.mrb[32].mxu1 %v203_v59 }
  0x8a   :  { %986 = vmatprep.mubr.msk.f32.mxu0 %vm1231_vm0, %v1232_v1  ;;  %1073 = vmatprep.mubr.msk.f32.mxu1 %vm1231_vm0, %v1232_v1 }
  0x8d   :  { %987 = vmatmul.mubr.f32.gmra.mrb[34].mxu0 %v175_v60  ;;  %1074 = vmatmul.mubr.f32.gmra.mrb[34].mxu1 %v204_v61 }
  0x8e   :  { %989 = vmatprep.mubr.msk.f32.mxu0 %vm1231_vm0, %v1232_v1  ;;  %1076 = vmatprep.mubr.msk.f32.mxu1 %vm1231_vm0, %v1232_v1 }
  0x91   :  { %990 = vmatmul.mubr.f32.gmra.mrb[36].mxu0 %v176_v62  ;;  %1077 = vmatmul.mubr.f32.gmra.mrb[36].mxu1 %v205_v63 }
  0x92   :  { %992 = vmatprep.mubr.msk.f32.mxu0 %vm1231_vm0, %v1232_v1  ;;  %1079 = vmatprep.mubr.msk.f32.mxu1 %vm1231_vm0, %v1232_v1 }
  0x95   :  { %993 = vmatmul.mubr.f32.gmra.mrb[38].mxu0 %v177_v0  ;;  %1080 = vmatmul.mubr.f32.gmra.mrb[38].mxu1 %v206_v2 }
  0x96   :  { %995 = vmatprep.mubr.msk.f32.mxu0 %vm1231_vm0, %v1232_v1  ;;  %1082 = vmatprep.mubr.msk.f32.mxu1 %vm1231_vm0, %v1232_v1 }
  0x99   :  { %996 = vmatmul.mubr.f32.gmra.mrb[40].mxu0 %v178_v3  ;;  %1083 = vmatmul.mubr.f32.gmra.mrb[40].mxu1 %v207_v4 }
  0x9a   :  { %998 = vmatprep.mubr.msk.f32.mxu0 %vm1231_vm0, %v1232_v1  ;;  %1085 = vmatprep.mubr.msk.f32.mxu1 %vm1231_vm0, %v1232_v1 }
  0x9d   :  { %999 = vmatmul.mubr.f32.gmra.mrb[42].mxu0 %v179_v5  ;;  %1086 = vmatmul.mubr.f32.gmra.mrb[42].mxu1 %v208_v6 }
  0x9e   :  { %1001 = vmatprep.mubr.msk.f32.mxu0 %vm1231_vm0, %v1232_v1  ;;  %1088 = vmatprep.mubr.msk.f32.mxu1 %vm1231_vm0, %v1232_v1 }
  0xa1   :  { %1002 = vmatmul.mubr.f32.gmra.mrb[44].mxu0 %v180_v7  ;;  %1089 = vmatmul.mubr.f32.gmra.mrb[44].mxu1 %v209_v8 }
  0xa2   :  { %1004 = vmatprep.mubr.msk.f32.mxu0 %vm1231_vm0, %v1232_v1  ;;  %1091 = vmatprep.mubr.msk.f32.mxu1 %vm1231_vm0, %v1232_v1 }
  0xa5   :  { %1005 = vmatmul.mubr.f32.gmra.mrb[46].mxu0 %v181_v9  ;;  %1092 = vmatmul.mubr.f32.gmra.mrb[46].mxu1 %v210_v10 }
  0xa6   :  { %1007 = vmatprep.mubr.msk.f32.mxu0 %vm1231_vm0, %v1232_v1  ;;  %1094 = vmatprep.mubr.msk.f32.mxu1 %vm1231_vm0, %v1232_v1 }
  0xa9   :  { %1008 = vmatmul.mubr.f32.gmra.mrb[48].mxu0 %v182_v11  ;;  %1095 = vmatmul.mubr.f32.gmra.mrb[48].mxu1 %v211_v12 }
  0xaa   :  { %1010 = vmatprep.mubr.msk.f32.mxu0 %vm1231_vm0, %v1232_v1  ;;  %1097 = vmatprep.mubr.msk.f32.mxu1 %vm1231_vm0, %v1232_v1 }
  0xad   :  { %1011 = vmatmul.mubr.f32.gmra.mrb[50].mxu0 %v183_v13  ;;  %1098 = vmatmul.mubr.f32.gmra.mrb[50].mxu1 %v212_v14 }
  0xae   :  { %1013 = vmatprep.mubr.msk.f32.mxu0 %vm1231_vm0, %v1232_v1  ;;  %1100 = vmatprep.mubr.msk.f32.mxu1 %vm1231_vm0, %v1232_v1 }
  0xb1   :  { %1014 = vmatmul.mubr.f32.gmra.mrb[52].mxu0 %v184_v15  ;;  %1101 = vmatmul.mubr.f32.gmra.mrb[52].mxu1 %v213_v16 }
  0xb2   :  { %1016 = vmatprep.mubr.msk.f32.mxu0 %vm1231_vm0, %v1232_v1  ;;  %1103 = vmatprep.mubr.msk.f32.mxu1 %vm1231_vm0, %v1232_v1 }
  0xb5   :  { %1017 = vmatmul.mubr.f32.gmra.mrb[54].mxu0 %v185_v17  ;;  %1104 = vmatmul.mubr.f32.gmra.mrb[54].mxu1 %v214_v18 }
  0xb6   :  { %1019 = vmatprep.mubr.msk.f32.mxu0 %vm1231_vm0, %v1232_v1 }
  0xb9   :  { %1020 = vmatmul.mubr.f32.gmra.mrb[56].mxu0 %v186_v19 }
 0x11c   :  { %v297_v20 = vpop.f32.mrb[0].mxu0  ;;  %v442_v21 = vpop.f32.mrb[0].mxu1 }
 0x11d   :  { %755 = vst [vmem:[#allocation8] sm:$0xff] %v297_v20  ;;  %v937_v22 = vpop.f32.mrb[1].mxu0  ;;  %784 = vst [vmem:[#allocation8 + $0xe8] sm:$0xff] %v442_v21  ;;  %v1024_v23 = vpop.f32.mrb[1].mxu1 }
 0x120   :  { %v302_v24 = vpop.f32.mrb[2].mxu0  ;;  %v447_v25 = vpop.f32.mrb[2].mxu1 }
 0x121   :  { %756 = vst [vmem:[#allocation8 + $0x8] sm:$0xff] %v302_v24  ;;  %v940_v26 = vpop.f32.mrb[3].mxu0  ;;  %785 = vst [vmem:[#allocation8 + $0xf0] sm:$0xff] %v447_v25  ;;  %v1027_v27 = vpop.f32.mrb[3].mxu1 }
 0x124   :  { %v307_v28 = vpop.f32.mrb[4].mxu0  ;;  %v452_v29 = vpop.f32.mrb[4].mxu1 }
 0x125   :  { %757 = vst [vmem:[#allocation8 + $0x10] sm:$0xff] %v307_v28  ;;  %v943_v30 = vpop.f32.mrb[5].mxu0  ;;  %786 = vst [vmem:[#allocation8 + $0xf8] sm:$0xff] %v452_v29  ;;  %v1030_v1 = vpop.f32.mrb[5].mxu1 }
 0x128   :  { %v312_v31 = vpop.f32.mrb[6].mxu0  ;;  %v457_v32 = vpop.f32.mrb[6].mxu1 }
 0x129   :  { %758 = vst [vmem:[#allocation8 + $0x18] sm:$0xff] %v312_v31  ;;  %v946_v33 = vpop.f32.mrb[7].mxu0  ;;  %787 = vst [vmem:[#allocation8 + $0x100] sm:$0xff] %v457_v32  ;;  %v1033_v34 = vpop.f32.mrb[7].mxu1 }
 0x12c   :  { %v317_v35 = vpop.f32.mrb[8].mxu0  ;;  %v462_v36 = vpop.f32.mrb[8].mxu1 }
 0x12d   :  { %759 = vst [vmem:[#allocation8 + $0x20] sm:$0xff] %v317_v35  ;;  %v949_v37 = vpop.f32.mrb[9].mxu0  ;;  %788 = vst [vmem:[#allocation8 + $0x108] sm:$0xff] %v462_v36  ;;  %v1036_v38 = vpop.f32.mrb[9].mxu1 }
 0x130   :  { %v322_v39 = vpop.f32.mrb[10].mxu0  ;;  %v467_v40 = vpop.f32.mrb[10].mxu1 }
 0x131   :  { %760 = vst [vmem:[#allocation8 + $0x28] sm:$0xff] %v322_v39  ;;  %v952_v41 = vpop.f32.mrb[11].mxu0  ;;  %789 = vst [vmem:[#allocation8 + $0x110] sm:$0xff] %v467_v40  ;;  %v1039_v42 = vpop.f32.mrb[11].mxu1 }
 0x134   :  { %v327_v43 = vpop.f32.mrb[12].mxu0  ;;  %v472_v44 = vpop.f32.mrb[12].mxu1 }
 0x135   :  { %761 = vst [vmem:[#allocation8 + $0x30] sm:$0xff] %v327_v43  ;;  %v955_v45 = vpop.f32.mrb[13].mxu0  ;;  %790 = vst [vmem:[#allocation8 + $0x118] sm:$0xff] %v472_v44  ;;  %v1042_v46 = vpop.f32.mrb[13].mxu1 }
 0x138   :  { %v332_v47 = vpop.f32.mrb[14].mxu0  ;;  %v477_v48 = vpop.f32.mrb[14].mxu1 }
 0x139   :  { %762 = vst [vmem:[#allocation8 + $0x38] sm:$0xff] %v332_v47  ;;  %v958_v49 = vpop.f32.mrb[15].mxu0  ;;  %791 = vst [vmem:[#allocation8 + $0x120] sm:$0xff] %v477_v48  ;;  %v1045_v50 = vpop.f32.mrb[15].mxu1 }
 0x13c   :  { %v337_v51 = vpop.f32.mrb[16].mxu0  ;;  %v482_v52 = vpop.f32.mrb[16].mxu1 }
 0x13d   :  { %763 = vst [vmem:[#allocation8 + $0x40] sm:$0xff] %v337_v51  ;;  %v961_v53 = vpop.f32.mrb[17].mxu0  ;;  %792 = vst [vmem:[#allocation8 + $0x128] sm:$0xff] %v482_v52  ;;  %v1048_v54 = vpop.f32.mrb[17].mxu1 }
 0x140   :  { %v342_v55 = vpop.f32.mrb[18].mxu0  ;;  %v487_v56 = vpop.f32.mrb[18].mxu1 }
 0x141   :  { %764 = vst [vmem:[#allocation8 + $0x48] sm:$0xff] %v342_v55  ;;  %v964_v57 = vpop.f32.mrb[19].mxu0  ;;  %793 = vst [vmem:[#allocation8 + $0x130] sm:$0xff] %v487_v56  ;;  %v1051_v58 = vpop.f32.mrb[19].mxu1 }
 0x144   :  { %v347_v59 = vpop.f32.mrb[20].mxu0  ;;  %v492_v60 = vpop.f32.mrb[20].mxu1 }
 0x145   :  { %765 = vst [vmem:[#allocation8 + $0x50] sm:$0xff] %v347_v59  ;;  %v967_v61 = vpop.f32.mrb[21].mxu0  ;;  %794 = vst [vmem:[#allocation8 + $0x138] sm:$0xff] %v492_v60  ;;  %v1054_v62 = vpop.f32.mrb[21].mxu1 }
 0x148   :  { %v352_v63 = vpop.f32.mrb[22].mxu0  ;;  %v497_v0 = vpop.f32.mrb[22].mxu1 }
 0x149   :  { %766 = vst [vmem:[#allocation8 + $0x58] sm:$0xff] %v352_v63  ;;  %v970_v2 = vpop.f32.mrb[23].mxu0  ;;  %795 = vst [vmem:[#allocation8 + $0x140] sm:$0xff] %v497_v0  ;;  %v1057_v3 = vpop.f32.mrb[23].mxu1 }
 0x14c   :  { %v357_v4 = vpop.f32.mrb[24].mxu0  ;;  %v502_v5 = vpop.f32.mrb[24].mxu1 }
 0x14d   :  { %767 = vst [vmem:[#allocation8 + $0x60] sm:$0xff] %v357_v4  ;;  %v973_v6 = vpop.f32.mrb[25].mxu0  ;;  %796 = vst [vmem:[#allocation8 + $0x148] sm:$0xff] %v502_v5  ;;  %v1060_v7 = vpop.f32.mrb[25].mxu1 }
 0x150   :  { %v362_v8 = vpop.f32.mrb[26].mxu0  ;;  %v507_v9 = vpop.f32.mrb[26].mxu1 }
 0x151   :  { %768 = vst [vmem:[#allocation8 + $0x68] sm:$0xff] %v362_v8  ;;  %v976_v10 = vpop.f32.mrb[27].mxu0  ;;  %797 = vst [vmem:[#allocation8 + $0x150] sm:$0xff] %v507_v9  ;;  %v1063_v11 = vpop.f32.mrb[27].mxu1 }
 0x154   :  { %v367_v12 = vpop.f32.mrb[28].mxu0  ;;  %v512_v13 = vpop.f32.mrb[28].mxu1 }
 0x155   :  { %769 = vst [vmem:[#allocation8 + $0x70] sm:$0xff] %v367_v12  ;;  %v979_v14 = vpop.f32.mrb[29].mxu0  ;;  %798 = vst [vmem:[#allocation8 + $0x158] sm:$0xff] %v512_v13  ;;  %v1066_v15 = vpop.f32.mrb[29].mxu1 }
 0x158   :  { %v372_v16 = vpop.f32.mrb[30].mxu0  ;;  %v517_v17 = vpop.f32.mrb[30].mxu1 }
 0x159   :  { %770 = vst [vmem:[#allocation8 + $0x78] sm:$0xff] %v372_v16  ;;  %v982_v18 = vpop.f32.mrb[31].mxu0  ;;  %799 = vst [vmem:[#allocation8 + $0x160] sm:$0xff] %v517_v17  ;;  %v1069_v19 = vpop.f32.mrb[31].mxu1 }
 0x15c   :  { %v377_v20 = vpop.f32.mrb[32].mxu0  ;;  %v522_v21 = vpop.f32.mrb[32].mxu1 }
 0x15d   :  { %771 = vst [vmem:[#allocation8 + $0x80] sm:$0xff] %v377_v20  ;;  %v985_v22 = vpop.f32.mrb[33].mxu0  ;;  %800 = vst [vmem:[#allocation8 + $0x168] sm:$0xff] %v522_v21  ;;  %v1072_v23 = vpop.f32.mrb[33].mxu1 }
 0x160   :  { %v382_v24 = vpop.f32.mrb[34].mxu0  ;;  %v527_v25 = vpop.f32.mrb[34].mxu1 }
 0x161   :  { %772 = vst [vmem:[#allocation8 + $0x88] sm:$0xff] %v382_v24  ;;  %v988_v26 = vpop.f32.mrb[35].mxu0  ;;  %801 = vst [vmem:[#allocation8 + $0x170] sm:$0xff] %v527_v25  ;;  %v1075_v27 = vpop.f32.mrb[35].mxu1 }
 0x164   :  { %v387_v28 = vpop.f32.mrb[36].mxu0  ;;  %v532_v29 = vpop.f32.mrb[36].mxu1 }
 0x165   :  { %773 = vst [vmem:[#allocation8 + $0x90] sm:$0xff] %v387_v28  ;;  %v991_v30 = vpop.f32.mrb[37].mxu0  ;;  %802 = vst [vmem:[#allocation8 + $0x178] sm:$0xff] %v532_v29  ;;  %v1078_v1 = vpop.f32.mrb[37].mxu1 }
 0x168   :  { %v392_v31 = vpop.f32.mrb[38].mxu0  ;;  %v537_v32 = vpop.f32.mrb[38].mxu1 }
 0x169   :  { %774 = vst [vmem:[#allocation8 + $0x98] sm:$0xff] %v392_v31  ;;  %v994_v33 = vpop.f32.mrb[39].mxu0  ;;  %803 = vst [vmem:[#allocation8 + $0x180] sm:$0xff] %v537_v32  ;;  %v1081_v34 = vpop.f32.mrb[39].mxu1 }
 0x16c   :  { %v397_v35 = vpop.f32.mrb[40].mxu0  ;;  %v542_v36 = vpop.f32.mrb[40].mxu1 }
 0x16d   :  { %775 = vst [vmem:[#allocation8 + $0xa0] sm:$0xff] %v397_v35  ;;  %v997_v37 = vpop.f32.mrb[41].mxu0  ;;  %804 = vst [vmem:[#allocation8 + $0x188] sm:$0xff] %v542_v36  ;;  %v1084_v38 = vpop.f32.mrb[41].mxu1 }
 0x170   :  { %v402_v39 = vpop.f32.mrb[42].mxu0  ;;  %v547_v40 = vpop.f32.mrb[42].mxu1 }
 0x171   :  { %776 = vst [vmem:[#allocation8 + $0xa8] sm:$0xff] %v402_v39  ;;  %v1000_v41 = vpop.f32.mrb[43].mxu0  ;;  %805 = vst [vmem:[#allocation8 + $0x190] sm:$0xff] %v547_v40  ;;  %v1087_v42 = vpop.f32.mrb[43].mxu1 }
 0x174   :  { %v407_v43 = vpop.f32.mrb[44].mxu0  ;;  %v552_v44 = vpop.f32.mrb[44].mxu1 }
 0x175   :  { %777 = vst [vmem:[#allocation8 + $0xb0] sm:$0xff] %v407_v43  ;;  %v1003_v45 = vpop.f32.mrb[45].mxu0  ;;  %806 = vst [vmem:[#allocation8 + $0x198] sm:$0xff] %v552_v44  ;;  %v1090_v46 = vpop.f32.mrb[45].mxu1 }
 0x178   :  { %v412_v47 = vpop.f32.mrb[46].mxu0  ;;  %v557_v48 = vpop.f32.mrb[46].mxu1 }
 0x179   :  { %778 = vst [vmem:[#allocation8 + $0xb8] sm:$0xff] %v412_v47  ;;  %v1006_v49 = vpop.f32.mrb[47].mxu0  ;;  %807 = vst [vmem:[#allocation8 + $0x1a0] sm:$0xff] %v557_v48  ;;  %v1093_v50 = vpop.f32.mrb[47].mxu1 }
 0x17c   :  { %v417_v51 = vpop.f32.mrb[48].mxu0  ;;  %v562_v52 = vpop.f32.mrb[48].mxu1 }
 0x17d   :  { %779 = vst [vmem:[#allocation8 + $0xc0] sm:$0xff] %v417_v51  ;;  %v1009_v53 = vpop.f32.mrb[49].mxu0  ;;  %808 = vst [vmem:[#allocation8 + $0x1a8] sm:$0xff] %v562_v52  ;;  %v1096_v54 = vpop.f32.mrb[49].mxu1 }
 0x180   :  { %v422_v55 = vpop.f32.mrb[50].mxu0  ;;  %v567_v56 = vpop.f32.mrb[50].mxu1 }
 0x181   :  { %780 = vst [vmem:[#allocation8 + $0xc8] sm:$0xff] %v422_v55  ;;  %v1012_v57 = vpop.f32.mrb[51].mxu0  ;;  %809 = vst [vmem:[#allocation8 + $0x1b0] sm:$0xff] %v567_v56  ;;  %v1099_v58 = vpop.f32.mrb[51].mxu1 }
 0x184   :  { %v427_v59 = vpop.f32.mrb[52].mxu0  ;;  %v572_v60 = vpop.f32.mrb[52].mxu1 }
 0x185   :  { %781 = vst [vmem:[#allocation8 + $0xd0] sm:$0xff] %v427_v59  ;;  %v1015_v61 = vpop.f32.mrb[53].mxu0  ;;  %810 = vst [vmem:[#allocation8 + $0x1b8] sm:$0xff] %v572_v60  ;;  %v1102_v62 = vpop.f32.mrb[53].mxu1 }
 0x188   :  { %v432_v63 = vpop.f32.mrb[54].mxu0  ;;  %v577_v0 = vpop.f32.mrb[54].mxu1 }
 0x189   :  { %782 = vst [vmem:[#allocation8 + $0xd8] sm:$0xff] %v432_v63  ;;  %v1018_v2 = vpop.f32.mrb[55].mxu0  ;;  %811 = vst [vmem:[#allocation8 + $0x1c0] sm:$0xff] %v577_v0  ;;  %v1105_v3 = vpop.f32.mrb[55].mxu1 }
 0x18c   :  { %v437_v4 = vpop.f32.mrb[56].mxu0 }
 0x18d   :  { %783 = vst [vmem:[#allocation8 + $0xe0] sm:$0xff] %v437_v4  ;;  %v1021_v5 = vpop.f32.mrb[57].mxu0 }
 0x18e   :  { %1209 = shalt.err (!%p1206_p6)
}
 0x18f   :  { %s1210_s10 = scalar_lea.hbm %s1410_s2, 7296 }
 0x190   :  { %p1211_p7 = scmp.ne.s32.totalorder %s1410_s2, %s1210_s10  ;;  %p1214_p8 = scmp.lt.u32.totalorder %s1210_s10, %s1410_s2 }
 0x192   :  { %p1216_p9 = pnand %p1214_p8, %p1211_p7 }
 0x194   :  { %1219 = shalt.err (!%p1216_p9)
}
 0x195   :  { %823 = dma.vmem_to_hbm [thread:$0]  %s818_s6, 7296, %s1410_s2, [#allocation5], %s1227_s19, %s1227_s19, %s1228_s20  }
 0x196   :  { %1224 = dma.done.wait [#allocation5], 7296  }
 0x197   :  { %1225 = vsyncadd [#allocation5], 4294960000 }
 0x198   :  { %827 = vsyncpa [#allocation4], 1 }
 0x199   :  { %828 = vsyncpa [#allocation7], 1 }
 0x19a   :  { %829 = vsyncpa [#allocation5], 1 }

</bundles_post_ra>
